<compile_context>
chip_gen: v5e
topology: v5e:2x2
jax: 0.10.0
libtpu: 0.0.40
codegen_flags: <defaults>
</compile_context>

<pallas_src>
import functools

import jax
import jax.numpy as jnp
from jax import lax
from jax.experimental import pallas as pl
from jax.experimental.pallas import tpu as pltpu


_STATIC_UNROLL_MAX = 16           # fully unroll the layer loop up to this L
_TILE_BUDGET_BYTES = 2 * 1024 * 1024   # per batch-tile f32 budget (conservative)


# ----------------------------------------------------------------------------
# Pallas kernel: apply the whole affine chain to one batch tile.
# ----------------------------------------------------------------------------
def _chain_kernel(x_ref, mscale_ref, bias_ref, xout_ref, *, n_layers):
    # State is carried as an in-register/VMEM value inside one grid step; no
    # scratch buffers and a single store at the end.
    x = x_ref[...].astype(jnp.float32)

    if n_layers <= _STATIC_UNROLL_MAX:
        # Static unroll: L is known at trace time.
        for l in range(n_layers):
            m = mscale_ref[pl.ds(l, 1), :]   # (1, D)
            b = bias_ref[pl.ds(l, 1), :]     # (1, D)
            x = x * m + b
    else:
        def body(l, acc):
            m = mscale_ref[pl.ds(l, 1), :]
            b = bias_ref[pl.ds(l, 1), :]
            return acc * m + b
        x = lax.fori_loop(0, n_layers, body, x)

    xout_ref[...] = x.astype(xout_ref.dtype)


def _pick_batch_tile(B, D, bytes_per_elem=4, tile_budget_bytes=_TILE_BUDGET_BYTES):
    """Batch-tile rows: full batch if it fits, else a multiple of 8."""
    rows = max(1, tile_budget_bytes // (D * bytes_per_elem))
    if rows >= B:
        return B                      # block == full batch dim (always legal)
    return max(8, (rows // 8) * 8)    # satisfy the (8, 128) sublane rule


def _run_chain(x_flat, mscales, biases):
    """x_flat: [B, D]; mscales/biases: [L, D] (multiplicative scale, bias)."""
    B, D = x_flat.shape
    L = mscales.shape[0]
    bt = _pick_batch_tile(B, D)
    grid = (pl.cdiv(B, bt),)

    kernel = functools.partial(_chain_kernel, n_layers=L)

    xout = pl.pallas_call(
        kernel,
        grid_spec=pltpu.PrefetchScalarGridSpec(
            num_scalar_prefetch=0,
            grid=grid,
            in_specs=[
                # batch-tiled input, normally pipelined
                pl.BlockSpec((bt, D), lambda i: (i, 0)),
                # full (L, D) parameter blocks, resident across all tiles
                pl.BlockSpec((L, D), lambda i: (0, 0)),
                pl.BlockSpec((L, D), lambda i: (0, 0)),
            ],
            out_specs=pl.BlockSpec((bt, D), lambda i: (i, 0)),
        ),
        out_shape=jax.ShapeDtypeStruct((B, D), x_flat.dtype),
        compiler_params=pltpu.CompilerParams(
            dimension_semantics=("parallel",),   # batch tiles are independent
        ),
    )(x_flat, mscales, biases)
    return xout


# ----------------------------------------------------------------------------
# SequentialFlow container (JAX wrapper mirroring the PyTorch semantics).
# ----------------------------------------------------------------------------
class SequentialFlow:
    """Chain of elementwise-affine flow layers; chain order / reverse / inds
    semantics match the PyTorch container."""

    def __init__(self, scales, biases):
        # scales, biases: lists of [D] arrays, one pair per layer in the chain.
        assert len(scales) == len(biases)
        self.scales = [jnp.asarray(s, jnp.float32) for s in scales]
        self.biases = [jnp.asarray(b, jnp.float32) for b in biases]

    def __len__(self):
        return len(self.scales)

    def forward(self, x, logpx=None, condition=None, reverse=False, inds=None):
        # TODO(synk): `condition` is ignored — the synthetic affine layers are
        # unconditional (the container just passes it through to children).
        if inds is None:
            inds = range(len(self) - 1, -1, -1) if reverse else range(len(self))
        inds = list(inds)

        B = x.shape[0]
        x_flat = x.reshape(B, -1)
        D = x_flat.shape[1]

        if len(inds) == 0:
            if logpx is None:
                return x
            return x, jnp.asarray(logpx, jnp.float32).reshape(B, 1)

        # Build per-layer *effective* multiplicative scale + bias in visiting
        # order (exp precomputed here -> kernel is a pure mul-add per layer),
        # and hoist the x-independent log-det accumulation out of the kernel.
        m_list, b_list = [], []
        logdet = jnp.float32(0.0)
        for i in inds:
            s, b = self.scales[i], self.biases[i]
            if reverse:
                m_eff = jnp.exp(-s)
                b_eff = -b * m_eff
                logdet = logdet + jnp.sum(s)
            else:
                m_eff = jnp.exp(s)
                b_eff = b
                logdet = logdet - jnp.sum(s)
            m_list.append(m_eff)
            b_list.append(b_eff)
        mscales = jnp.stack(m_list, axis=0).reshape(len(inds), D)
        biases_eff = jnp.stack(b_list, axis=0).reshape(len(inds), D)

        xout_flat = _run_chain(x_flat, mscales, biases_eff)
        xout = xout_flat.reshape(x.shape)

        if logpx is None:
            return xout
        lp_in = jnp.asarray(logpx, jnp.float32).reshape(B, 1)
        return xout, lp_in + logdet

    __call__ = forward

    # Pure-JAX reference for verification.
    def forward_ref(self, x, logpx=None, condition=None, reverse=False, inds=None):
        if inds is None:
            inds = range(len(self) - 1, -1, -1) if reverse else range(len(self))
        B = x.shape[0]
        z = x.reshape(B, -1).astype(jnp.float32)
        lp = (jnp.zeros((B, 1), jnp.float32) if logpx is None
              else jnp.asarray(logpx, jnp.float32).reshape(B, 1))
        for i in inds:
            s, b = self.scales[i], self.biases[i]
            if reverse:
                z = (z - b[None, :]) * jnp.exp(-s)[None, :]
                lp = lp + jnp.sum(s)
            else:
                z = z * jnp.exp(s)[None, :] + b[None, :]
                lp = lp - jnp.sum(s)
        z = z.reshape(x.shape).astype(x.dtype)
        if logpx is None:
            return z
        return z, lp


# ----------------------------------------------------------------------------
if __name__ == "__main__":
    key = jax.random.PRNGKey(0)
    B, C, H, W = 2, 4, 16, 16
    D = C * H * W
    L = 3  # number of layers in the chain

    k_x, k_lp, *k_params = jax.random.split(key, 2 + 2 * L)
    x = jax.random.normal(k_x, (B, C, H, W), dtype=jnp.float32)
    logpx = jax.random.normal(k_lp, (B, 1), dtype=jnp.float32)

    scales = [0.05 * jax.random.normal(k_params[2 * i], (D,), jnp.float32)
              for i in range(L)]
    biases = [0.10 * jax.random.normal(k_params[2 * i + 1], (D,), jnp.float32)
              for i in range(L)]

    flow = SequentialFlow(scales, biases)

    # forward with logpx
    y, lpy = flow(x, logpx=logpx)
    y = jax.block_until_ready(y)
    lpy = jax.block_until_ready(lpy)
    y_ref, lpy_ref = flow.forward_ref(x, logpx=logpx)
    assert jnp.allclose(y, y_ref, atol=1e-5, rtol=1e-5)
    assert jnp.allclose(lpy, lpy_ref, atol=1e-4, rtol=1e-5)

    # forward without logpx
    y2 = jax.block_until_ready(flow(x))
    assert jnp.allclose(y2, flow.forward_ref(x), atol=1e-5, rtol=1e-5)

    # reverse pass recovers the input
    x_rec, lp_rec = flow(y, logpx=lpy, reverse=True)
    x_rec = jax.block_until_ready(x_rec)
    assert jnp.allclose(x_rec, x, atol=1e-4, rtol=1e-4)
    assert jnp.allclose(jax.block_until_ready(lp_rec), logpx, atol=1e-4, rtol=1e-4)

    # custom inds
    y3 = jax.block_until_ready(flow(x, inds=[2, 0]))
    assert jnp.allclose(y3, flow.forward_ref(x, inds=[2, 0]), atol=1e-5, rtol=1e-5)

    print("KERNEL_OK")
</pallas_src>

<mosaic_0001>
module attributes {stable_mosaic.version = 11 : i64} {
  func.func @_chain_kernel(%arg0: i32, %arg1: memref<2x1024xf32, #tpu.memory_space<vmem>>, %arg2: memref<3x1024xf32, #tpu.memory_space<vmem>>, %arg3: memref<3x1024xf32, #tpu.memory_space<vmem>>, %arg4: memref<2x1024xf32, #tpu.memory_space<vmem>>) attributes {dimension_semantics = [#tpu.dimension_semantics<parallel>], iteration_bounds = array<i64: 1>, scalar_prefetch = 0 : i64, scratch_operands = 0 : i64, tpu.core_type = #tpu.core_type<tc>, window_params = [{transform_indices = @transform_0, window_bounds = array<i64: 2, 1024>}, {pipeline_mode = #tpu.pipeline_mode<synchronous>, transform_indices = @transform_1, window_bounds = array<i64: 3, 1024>}, {pipeline_mode = #tpu.pipeline_mode<synchronous>, transform_indices = @transform_2, window_bounds = array<i64: 3, 1024>}, {transform_indices = @transform_3, window_bounds = array<i64: 2, 1024>}]} {
    %c0 = arith.constant 0 : index
    %c0_0 = arith.constant 0 : index
    %0 = vector.load %arg1[%c0, %c0_0] : memref<2x1024xf32, #tpu.memory_space<vmem>>, vector<2x1024xf32>
    %c0_1 = arith.constant 0 : index
    %c0_2 = arith.constant 0 : index
    %1 = vector.load %arg2[%c0_1, %c0_2] : memref<3x1024xf32, #tpu.memory_space<vmem>>, vector<1x1024xf32>
    %c0_3 = arith.constant 0 : index
    %c0_4 = arith.constant 0 : index
    %2 = vector.load %arg3[%c0_3, %c0_4] : memref<3x1024xf32, #tpu.memory_space<vmem>>, vector<1x1024xf32>
    %3 = vector.broadcast %1 : vector<1x1024xf32> to vector<2x1024xf32>
    %4 = arith.mulf %0, %3 : vector<2x1024xf32>
    %5 = vector.broadcast %2 : vector<1x1024xf32> to vector<2x1024xf32>
    %6 = arith.addf %4, %5 : vector<2x1024xf32>
    %c1 = arith.constant 1 : index
    %c0_5 = arith.constant 0 : index
    %7 = vector.load %arg2[%c1, %c0_5] : memref<3x1024xf32, #tpu.memory_space<vmem>>, vector<1x1024xf32>
    %c1_6 = arith.constant 1 : index
    %c0_7 = arith.constant 0 : index
    %8 = vector.load %arg3[%c1_6, %c0_7] : memref<3x1024xf32, #tpu.memory_space<vmem>>, vector<1x1024xf32>
    %9 = vector.broadcast %7 : vector<1x1024xf32> to vector<2x1024xf32>
    %10 = arith.mulf %6, %9 : vector<2x1024xf32>
    %11 = vector.broadcast %8 : vector<1x1024xf32> to vector<2x1024xf32>
    %12 = arith.addf %10, %11 : vector<2x1024xf32>
    %c2 = arith.constant 2 : index
    %c0_8 = arith.constant 0 : index
    %13 = vector.load %arg2[%c2, %c0_8] : memref<3x1024xf32, #tpu.memory_space<vmem>>, vector<1x1024xf32>
    %c2_9 = arith.constant 2 : index
    %c0_10 = arith.constant 0 : index
    %14 = vector.load %arg3[%c2_9, %c0_10] : memref<3x1024xf32, #tpu.memory_space<vmem>>, vector<1x1024xf32>
    %15 = vector.broadcast %13 : vector<1x1024xf32> to vector<2x1024xf32>
    %16 = arith.mulf %12, %15 : vector<2x1024xf32>
    %17 = vector.broadcast %14 : vector<1x1024xf32> to vector<2x1024xf32>
    %18 = arith.addf %16, %17 : vector<2x1024xf32>
    %c0_11 = arith.constant 0 : index
    %c0_12 = arith.constant 0 : index
    %19 = vector.load %arg4[%c0_11, %c0_12] : memref<2x1024xf32, #tpu.memory_space<vmem>>, vector<2x1024xf32>
    tpu.vector_store %arg4[%c0_11, %c0_12], %18 {strides = array<i32>} : memref<2x1024xf32, #tpu.memory_space<vmem>>, vector<2x1024xf32>,
    return
  }
  func.func @transform_0(%arg0: i32) -> (i32, i32) {
    %c0_i32 = arith.constant 0 : i32
    %c0_i32_0 = arith.constant 0 : i32
    return %arg0, %c0_i32 : i32, i32
  }
  func.func @transform_1(%arg0: i32) -> (i32, i32) {
    %c0_i32 = arith.constant 0 : i32
    %c0_i32_0 = arith.constant 0 : i32
    %c0_i32_1 = arith.constant 0 : i32
    return %c0_i32, %c0_i32_0 : i32, i32
  }
  func.func @transform_2(%arg0: i32) -> (i32, i32) {
    %c0_i32 = arith.constant 0 : i32
    %c0_i32_0 = arith.constant 0 : i32
    %c0_i32_1 = arith.constant 0 : i32
    return %c0_i32, %c0_i32_0 : i32, i32
  }
  func.func @transform_3(%arg0: i32) -> (i32, i32) {
    %c0_i32 = arith.constant 0 : i32
    %c0_i32_0 = arith.constant 0 : i32
    return %arg0, %c0_i32 : i32, i32
  }
}

</mosaic_0001>

<bundles_post_ra>
// kernel: tpu_custom_call.1
= control target key start
LH: loop header
LB: loop body
LE: loop exit
PB: predicated region body
PF: predicated region fallthrough
CT: control target
= control target key end

     0   :  { %8 = vsyncpa [#allocation3], 0  ;;  %s479_s0 = inlined_call_operand.hbm [shape: f32[2,1024], index: 0, kind: input, shape index: {}]   ;;  %s480_s1 = inlined_call_operand.hbm [shape: f32[3,1024], index: 1, kind: input, shape index: {}]   ;;  %s481_s2 = inlined_call_operand.hbm [shape: f32[3,1024], index: 2, kind: input, shape index: {}]   ;;  %s482_s3 = inlined_call_operand.hbm [shape: f32[2,1024], index: 3, kind: output, shape index: {}]  }
   0x1   :  { %9 = vsyncpa [#allocation6], 0  ;;  %s27_s14 = sshll.u32 %s480_s1, 4  ;;  %s28_s14 = int_to_ptr.hbm [resolvable:$true] %s27_s14 }
   0x2   :  { %10 = vsyncpa [#allocation4], 0  ;;  %s347_s15 = smov [#allocation5]   ;;  %s16_s19 = sshll.u32 %s479_s0, 4  ;;  %s17_s19 = int_to_ptr.hbm [resolvable:$true] %s16_s19 }
   0x3   :  { %s29_s16 = sshll.u32 %s347_s15, 4  ;;  %s348_s20 = smov [#allocation2]   ;;  %s30_s16 = int_to_ptr.vmem [resolvable:$true] %s29_s16 }
   0x4   :  { %32 = dma.hbm_to_vmem [thread:$0]  %s28_s14, 512, %s30_s16, [#allocation6]  }
   0x5   :  { %s18_s21 = sshll.u32 %s348_s20, 4  ;;  %s38_s24 = sshll.u32 %s481_s2, 4  ;;  %s19_s21 = int_to_ptr.vmem [resolvable:$true] %s18_s21  ;;  %s39_s24 = int_to_ptr.hbm [resolvable:$true] %s38_s24 }
   0x6   :  { %21 = dma.hbm_to_vmem [thread:$0]  %s17_s19, 256, %s19_s21, [#allocation3]  }
   0x7   :  { %s349_s1 = smov [#allocation7]  }
   0x8   :  { %s40_s25 = sshll.u32 %s349_s1, 4  ;;  %s41_s25 = int_to_ptr.vmem [resolvable:$true] %s40_s25 }
   0x9   :  { %43 = dma.hbm_to_vmem [thread:$0]  %s39_s24, 512, %s41_s25, [#allocation6]  }
   0xa   :  { %341 = dma.done.wait [#allocation3], 256  }
   0xb   :  { %342 = vsyncadd [#allocation3], 4294967040 }
   0xc   :  { %343 = dma.done.wait [#allocation6], 1024  }
   0xd   :  { %344 = vsyncadd [#allocation6], 4294966272  ;;  %vm75_vm0 = vcmask 1041408   ;;  %v380_v0 = vld [vmem:[#allocation5] ss:$4 sm:$0xff]  ;;  %vm77_vm1 = vcmask 1045508  }
   0xe   :  { %v382_v1 = vld [vmem:[#allocation7] ss:$4 sm:$0xff]  ;;  %vm79_vm2 = vcmask 1043456   ;;  %v61_v2 = vperm.slane %v380_v0, 0  ;;  %v62_v3 = vperm.slane %v380_v0, 1  ;;  %v63_v4 = vperm.slane %v380_v0, 2 }
   0xf   :  { %v64_v5 = vperm.slane %v380_v0, 3  ;;  %v388_v6 = vld [vmem:[#allocation5 + $0x1] ss:$4 sm:$0xff]  ;;  %v89_v7 = vperm.slane %v382_v1, 0  ;;  %v90_v8 = vperm.slane %v382_v1, 1  ;;  %v91_v9 = vperm.slane %v382_v1, 2 }
  0x10   :  { %v92_v10 = vperm.slane %v382_v1, 3  ;;  %v69_v11 = vrot.slane %v62_v3, 6  ;;  %v70_v12 = vrot.slane %v63_v4, 4  ;;  %v118_v14 = vperm.slane %v388_v6, 0  ;;  %v56_v15 = vld [vmem:[#allocation2] sm:$0xff]  ;;  %s350_s0 = smov [#allocation8]  }
  0x11   :  { %v71_v13 = vrot.slane %v64_v5, 2  ;;  %v97_v16 = vrot.slane %v90_v8, 6  ;;  %v98_v17 = vrot.slane %v91_v9, 4  ;;  %v119_v19 = vperm.slane %v388_v6, 1  ;;  %v398_v22 = vld [vmem:[#allocation7 + $0x1] ss:$4 sm:$0xff] }
  0x12   :  { %v99_v18 = vrot.slane %v92_v10, 2  ;;  %v76_v20 = vsel %vm75_vm0, %v61_v2, %v69_v11  ;;  %v120_v23 = vperm.slane %v388_v6, 2  ;;  %v121_v24 = vperm.slane %v388_v6, 3  ;;  %v406_v33 = vld [vmem:[#allocation5 + $0x2] ss:$4 sm:$0xff]  ;;  %s228_s2 = sshll.u32 %s350_s0, 4  ;;  %s229_s2 = int_to_ptr.vmem [resolvable:$true] %s228_s2 }
  0x13   :  { %v78_v21 = vsel %vm77_vm1, %v70_v12, %v71_v13  ;;  %v103_v26 = vsel %vm75_vm0, %v89_v7, %v97_v16  ;;  %v126_v28 = vrot.slane %v119_v19, 6  ;;  %v143_v35 = vperm.slane %v398_v22, 0  ;;  %v414_v41 = vld [vmem:[#allocation7 + $0x2] ss:$4 sm:$0xff]  ;;  %s230_s28 = sshll.u32 %s482_s3, 4  ;;  %s231_s28 = int_to_ptr.hbm [resolvable:$true] %s230_s28 }
  0x14   :  { %v80_v25 = vsel %vm79_vm2, %v76_v20, %v78_v21  ;;  %v104_v27 = vsel %vm77_vm1, %v98_v17, %v99_v18  ;;  %v127_v31 = vrot.slane %v120_v23, 4  ;;  %v128_v32 = vrot.slane %v121_v24, 2  ;;  %v57_v24 = vld [vmem:[#allocation2 + $0x8] sm:$0xff] }
  0x15   :  { %v86_v29 = vmul.f32 %v80_v25, %v56_v15  ;;  %v105_v30 = vsel %vm79_vm2, %v103_v26, %v104_v27  ;;  %v132_v34 = vsel %vm75_vm0, %v118_v14, %v126_v28  ;;  %v144_v36 = vperm.slane %v398_v22, 1 }
  0x16   :  { %v145_v37 = vperm.slane %v398_v22, 2  ;;  %v133_v39 = vsel %vm77_vm1, %v127_v31, %v128_v32  ;;  %v146_v40 = vperm.slane %v398_v22, 3  ;;  %v172_v42 = vperm.slane %v406_v33, 0 }
  0x17   :  { %v111_v38 = vadd.f32 %v105_v30, %v86_v29  ;;  %v134_v43 = vsel %vm79_vm2, %v132_v34, %v133_v39  ;;  %v151_v44 = vrot.slane %v144_v36, 6  ;;  %v173_v46 = vperm.slane %v406_v33, 1 }
  0x18   :  { %v152_v45 = vrot.slane %v145_v37, 4  ;;  %v153_v48 = vrot.slane %v146_v40, 2  ;;  %v174_v49 = vperm.slane %v406_v33, 2  ;;  %v175_v50 = vperm.slane %v406_v33, 3 }
  0x19   :  { %v140_v47 = vmul.f32 %v134_v43, %v111_v38  ;;  %v157_v51 = vsel %vm75_vm0, %v143_v35, %v151_v44  ;;  %v180_v52 = vrot.slane %v173_v46, 6  ;;  %v197_v53 = vperm.slane %v414_v41, 0 }
  0x1a   :  { %v198_v54 = vperm.slane %v414_v41, 1  ;;  %v158_v55 = vsel %vm77_vm1, %v152_v45, %v153_v48  ;;  %v181_v56 = vrot.slane %v174_v49, 4  ;;  %v182_v57 = vrot.slane %v175_v50, 2 }
  0x1b   :  { %v199_v58 = vperm.slane %v414_v41, 2  ;;  %v159_v59 = vsel %vm79_vm2, %v157_v51, %v158_v55  ;;  %v186_v60 = vsel %vm75_vm0, %v172_v42, %v180_v52  ;;  %v200_v61 = vperm.slane %v414_v41, 3 }
  0x1c   :  { %v205_v62 = vrot.slane %v198_v54, 6  ;;  %v165_v63 = vadd.f32 %v159_v59, %v140_v47  ;;  %v187_v2 = vsel %vm77_vm1, %v181_v56, %v182_v57  ;;  %v65_v4 = vperm.slane %v380_v0, 4 }
  0x1d   :  { %v206_v3 = vrot.slane %v199_v58, 4  ;;  %v188_v5 = vsel %vm79_vm2, %v186_v60, %v187_v2  ;;  %v207_v7 = vrot.slane %v200_v61, 2  ;;  %v66_v9 = vperm.slane %v380_v0, 5 }
  0x1e   :  { %v211_v8 = vsel %vm75_vm0, %v197_v53, %v205_v62  ;;  %v194_v10 = vmul.f32 %v188_v5, %v165_v63  ;;  %v67_v11 = vperm.slane %v380_v0, 6  ;;  %v68_v12 = vperm.slane %v380_v0, 7 }
  0x1f   :  { %v93_v13 = vperm.slane %v382_v1, 4  ;;  %v212_v14 = vsel %vm77_vm1, %v206_v3, %v207_v7  ;;  %v72_v15 = vrot.slane %v66_v9, 6  ;;  %v94_v16 = vperm.slane %v382_v1, 5 }
  0x20   :  { %v95_v17 = vperm.slane %v382_v1, 6  ;;  %v213_v18 = vsel %vm79_vm2, %v211_v8, %v212_v14  ;;  %v73_v19 = vrot.slane %v67_v11, 4  ;;  %v74_v20 = vrot.slane %v68_v12, 2 }
  0x21   :  { %v96_v21 = vperm.slane %v382_v1, 7  ;;  %v219_v23 = vadd.f32 %v213_v18, %v194_v10  ;;  %v81_v25 = vsel %vm75_vm0, %v65_v4, %v72_v15  ;;  %v100_v0 = vrot.slane %v94_v16, 6 }
  0x22   :  { %v101_v26 = vrot.slane %v95_v17, 4  ;;  %v82_v27 = vsel %vm77_vm1, %v73_v19, %v74_v20  ;;  %v122_v29 = vperm.slane %v388_v6, 4  ;;  %v123_v30 = vperm.slane %v388_v6, 5 }
  0x23   :  { %v102_v28 = vrot.slane %v96_v21, 2  ;;  %221 = vst [vmem:[#allocation8] sm:$0xff] %v219_v23  ;;  %v83_v31 = vsel %vm79_vm2, %v81_v25, %v82_v27  ;;  %v106_v32 = vsel %vm75_vm0, %v93_v13, %v100_v0  ;;  %v124_v1 = vperm.slane %v388_v6, 6 }
  0x24   :  { %v125_v34 = vperm.slane %v388_v6, 7  ;;  %v87_v35 = vmul.f32 %v83_v31, %v57_v24  ;;  %v129_v37 = vrot.slane %v123_v30, 6  ;;  %v147_v38 = vperm.slane %v398_v22, 4 }
  0x25   :  { %v107_v36 = vsel %vm77_vm1, %v101_v26, %v102_v28  ;;  %v130_v40 = vrot.slane %v124_v1, 4  ;;  %v148_v43 = vperm.slane %v398_v22, 5  ;;  %v149_v46 = vperm.slane %v398_v22, 6 }
  0x26   :  { %v108_v39 = vsel %vm79_vm2, %v106_v32, %v107_v36  ;;  %v131_v42 = vrot.slane %v125_v34, 2  ;;  %v135_v45 = vsel %vm75_vm0, %v122_v29, %v129_v37  ;;  %v150_v47 = vperm.slane %v398_v22, 7 }
  0x27   :  { %v112_v44 = vadd.f32 %v108_v39, %v87_v35  ;;  %v154_v48 = vrot.slane %v148_v43, 6  ;;  %v176_v49 = vperm.slane %v406_v33, 4  ;;  %v177_v50 = vperm.slane %v406_v33, 5 }
  0x28   :  { %v136_v6 = vsel %vm77_vm1, %v130_v40, %v131_v42  ;;  %v155_v52 = vrot.slane %v149_v46, 4  ;;  %v156_v53 = vrot.slane %v150_v47, 2  ;;  %v178_v54 = vperm.slane %v406_v33, 6 }
  0x29   :  { %v137_v51 = vsel %vm79_vm2, %v135_v45, %v136_v6  ;;  %v160_v56 = vsel %vm75_vm0, %v147_v38, %v154_v48  ;;  %v179_v57 = vperm.slane %v406_v33, 7  ;;  %v183_v58 = vrot.slane %v177_v50, 6 }
  0x2a   :  { %v141_v55 = vmul.f32 %v137_v51, %v112_v44  ;;  %v161_v22 = vsel %vm77_vm1, %v155_v52, %v156_v53  ;;  %v184_v59 = vrot.slane %v178_v54, 4  ;;  %v201_v60 = vperm.slane %v414_v41, 4 }
  0x2b   :  { %v202_v61 = vperm.slane %v414_v41, 5  ;;  %v162_v62 = vsel %vm79_vm2, %v160_v56, %v161_v22  ;;  %v185_v63 = vrot.slane %v179_v57, 2  ;;  %v189_v2 = vsel %vm75_vm0, %v176_v49, %v183_v58 }
  0x2c   :  { %v203_v3 = vperm.slane %v414_v41, 6  ;;  %v166_v4 = vadd.f32 %v162_v62, %v141_v55  ;;  %v204_v5 = vperm.slane %v414_v41, 7 }
  0x2d   :  { %v208_v7 = vrot.slane %v202_v61, 6  ;;  %v190_v33 = vsel %vm77_vm1, %v184_v59, %v185_v63 }
  0x2e   :  { %v209_v8 = vrot.slane %v203_v3, 4  ;;  %v191_v9 = vsel %vm79_vm2, %v189_v2, %v190_v33  ;;  %v210_v10 = vrot.slane %v204_v5, 2 }
  0x2f   :  { %v214_v11 = vsel %vm75_vm0, %v201_v60, %v208_v7  ;;  %v195_v12 = vmul.f32 %v191_v9, %v166_v4 }
  0x30   :  { %v215_v13 = vsel %vm77_vm1, %v209_v8, %v210_v10 }
  0x31   :  { %v216_v41 = vsel %vm79_vm2, %v214_v11, %v215_v13 }
  0x32   :  { %v220_v14 = vadd.f32 %v216_v41, %v195_v12 }
  0x34   :  { %222 = vst [vmem:[#allocation8 + $0x8] sm:$0xff] %v220_v14 }
  0x35   :  { %233 = dma.vmem_to_hbm [thread:$0]  %s229_s2, 256, %s231_s28, [#allocation4]  }
  0x36   :  { %345 = dma.done.wait [#allocation4], 256  }
  0x37   :  { %346 = vsyncadd [#allocation4], 4294967040 }
  0x38   :  { %238 = vsyncpa [#allocation3], 1 }
  0x39   :  { %239 = vsyncpa [#allocation6], 1 }
  0x3a   :  { %240 = vsyncpa [#allocation4], 1 }

</bundles_post_ra>
